<compile_context>
chip_gen: v7x
topology: tpu7x:2x2x1
jax: 0.10.0
libtpu: 0.0.40
codegen_flags: <defaults>
</compile_context>

<pallas_src>
import jax
import jax.numpy as jnp
from jax.experimental import pallas as pl
from jax.experimental.pallas import tpu as pltpu

# Logical (PyTorch) sizes
BATCH = 1
IN_F = 7
OUT_F = 3

# Padded TPU-friendly sizes for the (hoisted, once-per-model) weight tile.
PAD_K = 8     # 7 weight rows + 1 fused (bias + h2) row
PAD_N = 128   # lane multiple for the weight tile's output columns


def make_linear_add_call(batch):
    """Build a gridless pallas_call for a given static batch size."""

    def linear_add_kernel(x_ref, wt_ref, o_ref):
        # x_ref : SMEM (batch, IN_F)   raw activations (scalars)
        # wt_ref: VMEM (PAD_K, PAD_N)  rows 0..6 = W.T, row 7 = bias + h2
        # o_ref : VMEM (batch, OUT_F)  exact-size output (no wrapper slice)
        w = wt_ref[...]                          # (PAD_K, PAD_N)
        bias_row = w[IN_F:IN_F + 1, :]           # (1, PAD_N) fused bias + h2
        for b in range(batch):                   # static unroll (tiny batch)
            acc = bias_row
            for k in range(IN_F):                # 7 scalar x vreg VPU FMAs
                acc = acc + x_ref[b, k] * w[k:k + 1, :]
            o_ref[b:b + 1, :] = acc[:, :OUT_F]   # masked store of (1, 3)

    cost = pl.CostEstimate(
        flops=2 * batch * IN_F * OUT_F,
        transcendentals=0,
        bytes_accessed=(batch * IN_F + PAD_K * PAD_N + batch * OUT_F) * 4,
    )

    return pl.pallas_call(
        linear_add_kernel,
        out_shape=jax.ShapeDtypeStruct((batch, OUT_F), jnp.float32),
        in_specs=[
            pl.BlockSpec(memory_space=pltpu.MemorySpace.SMEM),   # x (scalars)
            pl.BlockSpec(memory_space=pltpu.MemorySpace.VMEM),   # augmented W.T
        ],
        out_specs=pl.BlockSpec(memory_space=pltpu.MemorySpace.VMEM),
        cost_estimate=cost,
    )


# TODO(synk): for large static batches (>~64) switch to a VMEM x tile + single
# MXU matmul with a bigger PAD_M (still gridless) instead of the scalar unroll.
_linear_add_call = make_linear_add_call(BATCH)


def pad_params(weight, bias, h2):
    """One-time (hoisted) packing of the parameters: pad W.T to (8, 128) and
    fold bias + h2 into the spare 8th K row. weight: (3,7), bias: (3,), h2: (1,3)."""
    wt_aug = jnp.zeros((PAD_K, PAD_N), jnp.float32)
    wt_aug = wt_aug.at[:IN_F, :OUT_F].set(weight.T)
    wt_aug = wt_aug.at[IN_F, :OUT_F].set(bias + h2[0])
    return wt_aug


@jax.jit
def linear_add(x, wt_aug):
    """x: (BATCH, 7) f32 raw activations; wt_aug: pre-packed params."""
    return _linear_add_call(x, wt_aug)


if __name__ == "__main__":
    key = jax.random.PRNGKey(0)
    k_x, k_w, k_b, k_h2 = jax.random.split(key, 4)

    # Deterministic synthetic parameters matching Linear(7, 3) shapes.
    x1 = jax.random.normal(k_x, (BATCH, IN_F), dtype=jnp.float32)
    weight = jax.random.normal(k_w, (OUT_F, IN_F), dtype=jnp.float32) * 0.1
    bias = jax.random.normal(k_b, (OUT_F,), dtype=jnp.float32) * 0.1
    h2 = jax.random.normal(k_h2, (1, OUT_F), dtype=jnp.float32)

    # Hoisted (once-per-model) parameter packing: pad W.T + fuse bias/h2.
    wt_aug = pad_params(weight, bias, h2)

    out = linear_add(x1, wt_aug)
    jax.block_until_ready(out)

    # Reference check in plain JAX.
    ref = x1 @ weight.T + bias + h2
    assert out.shape == (BATCH, OUT_F)
    assert jnp.allclose(out, ref, atol=1e-5), (out, ref)

    print("KERNEL_OK")
</pallas_src>

<mosaic_0001>
module attributes {stable_mosaic.version = 11 : i64} {
  func.func @linear_add_kernel(%arg0: memref<1x7xf32, #tpu.memory_space<smem>>, %arg1: memref<8x128xf32, #tpu.memory_space<vmem>>, %arg2: memref<1x3xf32, #tpu.memory_space<vmem>>) attributes {dimension_semantics = [], scalar_prefetch = 0 : i64, scratch_operands = 0 : i64, tpu.core_type = #tpu.core_type<tc>} {
    %c0 = arith.constant 0 : index
    %c0_0 = arith.constant 0 : index
    %0 = vector.load %arg1[%c0, %c0_0] : memref<8x128xf32, #tpu.memory_space<vmem>>, vector<8x128xf32>
    %1 = vector.extract_strided_slice %0 {offsets = [7, 0], sizes = [1, 128], strides = [1, 1]} : vector<8x128xf32> to vector<1x128xf32>
    %c0_1 = arith.constant 0 : index
    %c0_2 = arith.constant 0 : index
    %2 = memref.load %arg0[%c0_1, %c0_2] : memref<1x7xf32, #tpu.memory_space<smem>>
    %3 = vector.extract_strided_slice %0 {offsets = [0, 0], sizes = [1, 128], strides = [1, 1]} : vector<8x128xf32> to vector<1x128xf32>
    %4 = vector.broadcast %2 : f32 to vector<1x128xf32>
    %5 = arith.mulf %4, %3 : vector<1x128xf32>
    %6 = arith.addf %1, %5 : vector<1x128xf32>
    %c0_3 = arith.constant 0 : index
    %c1 = arith.constant 1 : index
    %7 = memref.load %arg0[%c0_3, %c1] : memref<1x7xf32, #tpu.memory_space<smem>>
    %8 = vector.extract_strided_slice %0 {offsets = [1, 0], sizes = [1, 128], strides = [1, 1]} : vector<8x128xf32> to vector<1x128xf32>
    %9 = vector.broadcast %7 : f32 to vector<1x128xf32>
    %10 = arith.mulf %9, %8 : vector<1x128xf32>
    %11 = arith.addf %6, %10 : vector<1x128xf32>
    %c0_4 = arith.constant 0 : index
    %c2 = arith.constant 2 : index
    %12 = memref.load %arg0[%c0_4, %c2] : memref<1x7xf32, #tpu.memory_space<smem>>
    %13 = vector.extract_strided_slice %0 {offsets = [2, 0], sizes = [1, 128], strides = [1, 1]} : vector<8x128xf32> to vector<1x128xf32>
    %14 = vector.broadcast %12 : f32 to vector<1x128xf32>
    %15 = arith.mulf %14, %13 : vector<1x128xf32>
    %16 = arith.addf %11, %15 : vector<1x128xf32>
    %c0_5 = arith.constant 0 : index
    %c3 = arith.constant 3 : index
    %17 = memref.load %arg0[%c0_5, %c3] : memref<1x7xf32, #tpu.memory_space<smem>>
    %18 = vector.extract_strided_slice %0 {offsets = [3, 0], sizes = [1, 128], strides = [1, 1]} : vector<8x128xf32> to vector<1x128xf32>
    %19 = vector.broadcast %17 : f32 to vector<1x128xf32>
    %20 = arith.mulf %19, %18 : vector<1x128xf32>
    %21 = arith.addf %16, %20 : vector<1x128xf32>
    %c0_6 = arith.constant 0 : index
    %c4 = arith.constant 4 : index
    %22 = memref.load %arg0[%c0_6, %c4] : memref<1x7xf32, #tpu.memory_space<smem>>
    %23 = vector.extract_strided_slice %0 {offsets = [4, 0], sizes = [1, 128], strides = [1, 1]} : vector<8x128xf32> to vector<1x128xf32>
    %24 = vector.broadcast %22 : f32 to vector<1x128xf32>
    %25 = arith.mulf %24, %23 : vector<1x128xf32>
    %26 = arith.addf %21, %25 : vector<1x128xf32>
    %c0_7 = arith.constant 0 : index
    %c5 = arith.constant 5 : index
    %27 = memref.load %arg0[%c0_7, %c5] : memref<1x7xf32, #tpu.memory_space<smem>>
    %28 = vector.extract_strided_slice %0 {offsets = [5, 0], sizes = [1, 128], strides = [1, 1]} : vector<8x128xf32> to vector<1x128xf32>
    %29 = vector.broadcast %27 : f32 to vector<1x128xf32>
    %30 = arith.mulf %29, %28 : vector<1x128xf32>
    %31 = arith.addf %26, %30 : vector<1x128xf32>
    %c0_8 = arith.constant 0 : index
    %c6 = arith.constant 6 : index
    %32 = memref.load %arg0[%c0_8, %c6] : memref<1x7xf32, #tpu.memory_space<smem>>
    %33 = vector.extract_strided_slice %0 {offsets = [6, 0], sizes = [1, 128], strides = [1, 1]} : vector<8x128xf32> to vector<1x128xf32>
    %34 = vector.broadcast %32 : f32 to vector<1x128xf32>
    %35 = arith.mulf %34, %33 : vector<1x128xf32>
    %36 = arith.addf %31, %35 : vector<1x128xf32>
    %37 = vector.extract_strided_slice %36 {offsets = [0, 0], sizes = [1, 3], strides = [1, 1]} : vector<1x128xf32> to vector<1x3xf32>
    %c0_9 = arith.constant 0 : index
    %c0_10 = arith.constant 0 : index
    %38 = vector.load %arg2[%c0_9, %c0_10] : memref<1x3xf32, #tpu.memory_space<vmem>>, vector<1x3xf32>
    tpu.vector_store %arg2[%c0_9, %c0_10], %37 {strides = array<i32>} : memref<1x3xf32, #tpu.memory_space<vmem>>, vector<1x3xf32>,
    return
  }
}

</mosaic_0001>

<bundles_post_ra>
// kernel: linear_add.1
= control target key start
LH: loop header
LB: loop body
LE: loop exit
PB: predicated region body
PF: predicated region fallthrough
CT: control target
= control target key end

     0   :  { %7 = vsyncpa [#allocation5], 0  ;;  %s226_s0 = inlined_call_operand.hbm [shape: f32[1,7], index: 0, kind: input, shape index: {}]   ;;  %s227_s1 = inlined_call_operand.hbm [shape: f32[8,128], index: 1, kind: input, shape index: {}]   ;;  %s228_s2 = inlined_call_operand.hbm [shape: f32[1,3], index: 2, kind: output, shape index: {}]  }
   0x1   :  { %8 = vsyncpa [#allocation3], 0 }
   0x2   :  { %9 = vsyncpa [#allocation4], 0  ;;  %s112_s11 = scalar_lea.hbm %s226_s0, 16 }
   0x3   :  { %p113_p0 = scmp.ne.s32.totalorder %s226_s0, %s112_s11  ;;  %p116_p1 = scmp.lt.u32.totalorder %s112_s11, %s226_s0 }
   0x5   :  { %p118_p2 = pnand %p116_p1, %p113_p0 }
   0x7   :  { %121 = shalt.err (!%p118_p2)
}
   0x8   :  { %s172_s16 = smov [#allocation2]   ;;  %s173_s19 = smov [#allocation6]  }
   0x9   :  { %17 = dma.hbm_to_smem %s226_s0, 16, %s172_s16, [#allocation5]  }
   0xa   :  { %s24_s20 = sshll.u32 %s173_s19, 4  ;;  %s122_s23 = scalar_lea.hbm %s227_s1, 128  ;;  %s25_s20 = int_to_ptr.vmem [resolvable:$true] %s24_s20 }
   0xb   :  { %p123_p3 = scmp.ne.s32.totalorder %s227_s1, %s122_s23  ;;  %p126_p4 = scmp.lt.u32.totalorder %s122_s23, %s227_s1 }
   0xd   :  { %p128_p5 = pnand %p126_p4, %p123_p3 }
   0xf   :  { %131 = shalt.err (!%p128_p5)
}
  0x10   :  { %s132_s28 = scalar_lea.vmem %s25_s20, 128  ;;  %p137_p7 = scmp.lt.s32.totalorder %s25_s20, %s25_s20 }
  0x11   :  { %p133_p6 = scmp.ne.s32.totalorder %s25_s20, %s132_s28  ;;  %p138_p8 = scmp.lt.s32.totalorder %s132_s28, %s132_s28 }
  0x13   :  { %p139_p9 = por %p138_p8, %p137_p7 }
  0x15   :  { %p140_p10 = pnand %p139_p9, %p133_p6 }
  0x17   :  { %143 = shalt.err (!%p140_p10)
}
  0x18   :  { %27 = dma.hbm_to_vmem [thread:$0]  %s227_s1, 128, %s25_s20, [#allocation3]  }
  0x19   :  { %166 = dma.done.wait [#allocation5], 16  }
  0x1a   :  { %167 = vsyncadd [#allocation5], 4294967280 }
  0x1b   :  { %168 = dma.done.wait [#allocation3], 128  }
  0x1c   :  { %169 = vsyncadd [#allocation3], 4294967168 }
  0x1d   :  { %34 = sfence }
  0x1e   :  { %s36_s30 = sld [smem:[#allocation2]]  ;;  %s103_s3 = sld [smem:[#allocation2 + $0x1]]  ;;  %v35_v0 = vld [vmem:[#allocation6] sm:$0xff]  ;;  %vm85_vm0 = vcmask 23559  }
  0x1f   :  { %s104_s4 = sld [smem:[#allocation2 + $0x2]]  ;;  %s105_s5 = sld [smem:[#allocation2 + $0x3]] }
  0x20   :  { %s106_s6 = sld [smem:[#allocation2 + $0x4]]  ;;  %s107_s7 = sld [smem:[#allocation2 + $0x5]] }
  0x21   :  { %s108_s8 = sld [smem:[#allocation2 + $0x6]]  ;;  %s174_s1 = smov [#allocation7]  }
  0x22   :  { %s93_s9 = sshll.u32 %s174_s1, 4  ;;  %s94_s9 = int_to_ptr.vmem [resolvable:$true] %s93_s9 }
  0x23   :  { %s144_s10 = scalar_lea.vmem %s94_s9, 16  ;;  %s148_s11 = scalar_lea.vmem %s94_s9, 32 }
  0x24   :  { %v37_v1 = vstv %s36_s30  ;;  %v44_v2 = vstv %s103_s3  ;;  %p145_p11 = scmp.ne.s32.totalorder %s94_s9, %s144_s10  ;;  %p149_p12 = scmp.lt.s32.totalorder %s94_s9, %s94_s9 }
  0x25   :  { %v38_v3 = vmul.f32 %v37_v1, %v35_v0  ;;  %v45_v4 = vmul.f32 %v44_v2, %v35_v0  ;;  %v51_v5 = vstv %s104_s4  ;;  %v58_v6 = vstv %s105_s5  ;;  %p150_p13 = scmp.lt.s32.totalorder %s148_s11, %s144_s10 }
  0x26   :  { %v52_v7 = vmul.f32 %v51_v5, %v35_v0  ;;  %v65_v8 = vstv %s106_s6  ;;  %v59_v11 = vmul.f32 %v58_v6, %v35_v0  ;;  %v72_v12 = vstv %s107_s7 }
  0x27   :  { %v40_v9 = vrot.slane %v38_v3, 1  ;;  %v47_v10 = vrot.slane %v45_v4, 2  ;;  %v66_v15 = vmul.f32 %v65_v8, %v35_v0  ;;  %v79_v16 = vstv %s108_s8  ;;  %p151_p0 = por %p150_p13, %p149_p12 }
  0x28   :  { %v54_v14 = vrot.slane %v52_v7, 3  ;;  %v61_v18 = vrot.slane %v59_v11, 4  ;;  %v73_v19 = vmul.f32 %v72_v12, %v35_v0  ;;  %v80_v22 = vmul.f32 %v79_v16, %v35_v0 }
  0x29   :  { %v42_v13 = vadd.f32 %v40_v9, %v35_v0  ;;  %v68_v21 = vrot.slane %v66_v15, 5  ;;  %p152_p1 = pnand %p151_p0, %p145_p11 }
  0x2a   :  { %v75_v24 = vrot.slane %v73_v19, 6  ;;  %v82_v26 = vrot.slane %v80_v22, 7 }
  0x2b   :  { %v49_v17 = vadd.f32 %v47_v10, %v42_v13 }
  0x2d   :  { %v56_v20 = vadd.f32 %v54_v14, %v49_v17 }
  0x2f   :  { %v63_v23 = vadd.f32 %v61_v18, %v56_v20 }
  0x31   :  { %v70_v25 = vadd.f32 %v68_v21, %v63_v23 }
  0x33   :  { %v77_v27 = vadd.f32 %v75_v24, %v70_v25 }
  0x35   :  { %v84_v28 = vadd.f32 %v82_v26, %v77_v27 }
  0x37   :  { %86 = vst.msk [vmem:[#allocation7 - $0x7] sm:$0x80] %vm85_vm0, %v84_v28 }
  0x38   :  { %155 = shalt.err (!%p152_p1)
}
  0x39   :  { %s156_s14 = scalar_lea.hbm %s228_s2, 16 }
  0x3a   :  { %p157_p2 = scmp.ne.s32.totalorder %s228_s2, %s156_s14  ;;  %p160_p3 = scmp.lt.u32.totalorder %s156_s14, %s228_s2 }
  0x3c   :  { %p162_p4 = pnand %p160_p3, %p157_p2 }
  0x3e   :  { %165 = shalt.err (!%p162_p4)
}
  0x3f   :  { %96 = dma.vmem_to_hbm [thread:$0]  %s94_s9, 16, %s228_s2, [#allocation4]  }
  0x40   :  { %170 = dma.done.wait [#allocation4], 16  }
  0x41   :  { %171 = vsyncadd [#allocation4], 4294967280 }
  0x42   :  { %100 = vsyncpa [#allocation3], 1 }
  0x43   :  { %101 = vsyncpa [#allocation4], 1 }
  0x44   :  { %102 = vsyncpa [#allocation5], 1 }

</bundles_post_ra>
